<compile_context>
chip_gen: v7x
topology: tpu7x:2x2x1
jax: 0.10.0
libtpu: 0.0.40
codegen_flags: <defaults>
</compile_context>

<pallas_src>
import functools

import jax
import jax.numpy as jnp
from jax.experimental import pallas as pl
from jax.experimental.pallas import tpu as pltpu

LANES = 128  # TPU lane width; only the *output* feature dim is padded to this.


def _round_up(n, m):
    return ((n + m - 1) // m) * m


def movienet_kernel(x_ref,
                    w0_ref, b0_ref,
                    w1_ref, b1_ref,
                    w2_ref, b2_ref,
                    w3_ref, b3_ref,
                    out_ref, *, num_classes):
    """Fused MLP forward on one batch tile: (Linear+ReLU) x 3 -> Linear -> Softmax."""
    # Input tile at native 32-lane width; cast to bf16 for the MXU.
    x = x_ref[...].astype(jnp.bfloat16)                        # [TILE_B, 32]

    # Input layer + input_act (ReLU). bf16 operands -> MXU, f32 accumulate.
    h = jnp.dot(x, w0_ref[...], preferred_element_type=jnp.float32) + b0_ref[...]
    h = jnp.maximum(h, 0.0)

    # Hidden layer 1 + hidden_act (dropout=0.0, batch_norm=False -> no-ops)
    h = jnp.dot(h.astype(jnp.bfloat16), w1_ref[...],
                preferred_element_type=jnp.float32) + b1_ref[...]
    h = jnp.maximum(h, 0.0)

    # Hidden layer 2 + hidden_act
    h = jnp.dot(h.astype(jnp.bfloat16), w2_ref[...],
                preferred_element_type=jnp.float32) + b2_ref[...]
    h = jnp.maximum(h, 0.0)

    # Output layer: (TILE_B, 32) x (32, 128-padded) -> lane-dense logits.
    logits = jnp.dot(h.astype(jnp.bfloat16), w3_ref[...],
                     preferred_element_type=jnp.float32) + b3_ref[...]

    # output_fn: Softmax(dim=-1) over the real class lanes only.
    # Lanes >= num_classes are zero-padding; mask them to a large negative so
    # their exp underflows to 0 and they do not perturb the distribution.
    lane = jax.lax.broadcasted_iota(jnp.int32, logits.shape, 1)
    masked = jnp.where(lane < num_classes, logits, -1e30)
    m = jnp.max(masked, axis=-1, keepdims=True)
    e = jnp.exp(masked - m)
    denom = jnp.sum(e, axis=-1, keepdims=True)
    # Exact normalization (VPU has plenty of slack; approx reciprocal not needed).
    out_ref[...] = (e / denom).astype(out_ref.dtype)


@functools.partial(jax.jit, static_argnames=("tile_b",))
def _movienet_forward_padded(x, params, tile_b):
    B, in_features = x.shape
    hidden = params["w0"].shape[1]
    num_classes = params["w3"].shape[1]
    out_lanes = _round_up(num_classes, LANES)   # lane-dense output store

    b_pad = _round_up(B, tile_b)
    grid = b_pad // tile_b

    # Row-pad x only when needed (trace-time branch); keep native 32 lanes, f32.
    x_p = x if b_pad == B else jnp.pad(x, ((0, b_pad - B), (0, 0)))

    # Weights: bf16 MXU operands at natural width; only the output layer's
    # columns are padded to 128 lanes.  Biases stay f32.
    w0 = params["w0"].astype(jnp.bfloat16)                     # (32, 32)
    w1 = params["w1"].astype(jnp.bfloat16)                     # (32, 32)
    w2 = params["w2"].astype(jnp.bfloat16)                     # (32, 32)
    w3 = jnp.pad(params["w3"].astype(jnp.bfloat16),
                 ((0, 0), (0, out_lanes - num_classes)))       # (32, 128)
    b0 = params["b0"].astype(jnp.float32)                      # (1, 32)
    b1 = params["b1"].astype(jnp.float32)
    b2 = params["b2"].astype(jnp.float32)
    b3 = jnp.pad(params["b3"].astype(jnp.float32),
                 ((0, 0), (0, out_lanes - num_classes)))       # (1, 128)

    act_in_spec = pl.BlockSpec((tile_b, in_features), lambda i: (i, 0))
    act_out_spec = pl.BlockSpec((tile_b, out_lanes), lambda i: (i, 0))
    wh_spec = pl.BlockSpec((in_features, hidden), lambda i: (0, 0))  # VMEM-resident
    bh_spec = pl.BlockSpec((1, hidden), lambda i: (0, 0))            # VMEM-resident
    wo_spec = pl.BlockSpec((hidden, out_lanes), lambda i: (0, 0))
    bo_spec = pl.BlockSpec((1, out_lanes), lambda i: (0, 0))

    kernel = functools.partial(movienet_kernel, num_classes=num_classes)

    out = pl.pallas_call(
        kernel,
        out_shape=jax.ShapeDtypeStruct((b_pad, out_lanes), jnp.bfloat16),
        grid=(grid,),
        in_specs=[act_in_spec,
                  wh_spec, bh_spec,
                  wh_spec, bh_spec,
                  wh_spec, bh_spec,
                  wo_spec, bo_spec],
        out_specs=act_out_spec,
        compiler_params=pltpu.CompilerParams(
            dimension_semantics=("parallel",)),
    )(x_p, w0, b0, w1, b1, w2, b2, w3, b3)

    # Slice real rows / classes; return f32 to match the PyTorch spec dtype.
    return out[:B, :num_classes].astype(jnp.float32)


def _pick_tile_b(B):
    """Big tiles to amortize the ~0.35us per-step overhead, but keep >=2 grid
    steps when the batch allows it so v7x's two TensorCores both get work."""
    b16 = _round_up(max(B, 1), 16)
    if b16 <= 16:
        return 16
    half = _round_up((b16 + 1) // 2, 16)
    return min(2048, half)


def movienet_forward(x, params, tile_b=None):
    """x: [B, input_size] f32.  params: dict of weights/biases (see init_params)."""
    B = x.shape[0]
    if tile_b is None:
        tile_b = _pick_tile_b(B)
    return _movienet_forward_padded(x, params, tile_b)


def init_params(key, input_size, hidden_size, num_classes):
    """Deterministic PyTorch-style (Kaiming-uniform-ish) init, stored as [in, out]."""
    def linear(k, fan_in, fan_out):
        kw, kb = jax.random.split(k)
        bound = 1.0 / jnp.sqrt(float(fan_in))
        w = jax.random.uniform(kw, (fan_in, fan_out), jnp.float32, -bound, bound)
        b = jax.random.uniform(kb, (1, fan_out), jnp.float32, -bound, bound)
        return w, b

    k0, k1, k2, k3 = jax.random.split(key, 4)
    w0, b0 = linear(k0, input_size, hidden_size)
    w1, b1 = linear(k1, hidden_size, hidden_size)
    w2, b2 = linear(k2, hidden_size, hidden_size)
    w3, b3 = linear(k3, hidden_size, num_classes)
    return dict(w0=w0, b0=b0, w1=w1, b1=b1, w2=w2, b2=b2, w3=w3, b3=b3)


def movienet_ref(x, p):
    """Pure-JAX f32 reference of the same forward pass."""
    h = jnp.maximum(x @ p["w0"] + p["b0"], 0.0)
    h = jnp.maximum(h @ p["w1"] + p["b1"], 0.0)
    h = jnp.maximum(h @ p["w2"] + p["b2"], 0.0)
    logits = h @ p["w3"] + p["b3"]
    return jax.nn.softmax(logits, axis=-1)


if __name__ == "__main__":
    B, INPUT_SIZE, HIDDEN_SIZE, NUM_CLASSES = 8, 32, 32, 8

    key = jax.random.PRNGKey(0)
    kx, kp, kx2 = jax.random.split(key, 3)
    x = jax.random.normal(kx, (B, INPUT_SIZE), dtype=jnp.float32)
    params = init_params(kp, INPUT_SIZE, HIDDEN_SIZE, NUM_CLASSES)

    # Small-batch check (single grid step, row padding to 16).
    out = jax.block_until_ready(movienet_forward(x, params))
    ref = movienet_ref(x, params)
    assert out.shape == (B, NUM_CLASSES)
    # bf16 matmul operands + bf16 output store -> loosen tolerances vs f32 ref.
    assert jnp.allclose(out, ref, atol=2e-2, rtol=2e-2), "mismatch vs JAX reference"
    assert jnp.allclose(jnp.sum(out, axis=-1), 1.0, atol=1e-2), "softmax rows must sum to 1"

    # Larger-batch check exercising the batch grid (grid >= 2) and row padding.
    B2 = 1000
    x2 = jax.random.normal(kx2, (B2, INPUT_SIZE), dtype=jnp.float32)
    out2 = jax.block_until_ready(movienet_forward(x2, params))
    ref2 = movienet_ref(x2, params)
    assert out2.shape == (B2, NUM_CLASSES)
    assert jnp.allclose(out2, ref2, atol=2e-2, rtol=2e-2), "mismatch vs JAX reference (large B)"
    assert jnp.allclose(jnp.sum(out2, axis=-1), 1.0, atol=1e-2), "softmax rows must sum to 1 (large B)"

    print("KERNEL_OK")
</pallas_src>

<mosaic_0001>
module attributes {stable_mosaic.version = 11 : i64} {
  func.func @movienet_kernel(%arg0: i32, %arg1: memref<16x32xf32, #tpu.memory_space<vmem>>, %arg2: memref<32x32xbf16, #tpu.memory_space<vmem>>, %arg3: memref<1x32xf32, #tpu.memory_space<vmem>>, %arg4: memref<32x32xbf16, #tpu.memory_space<vmem>>, %arg5: memref<1x32xf32, #tpu.memory_space<vmem>>, %arg6: memref<32x32xbf16, #tpu.memory_space<vmem>>, %arg7: memref<1x32xf32, #tpu.memory_space<vmem>>, %arg8: memref<32x128xbf16, #tpu.memory_space<vmem>>, %arg9: memref<1x128xf32, #tpu.memory_space<vmem>>, %arg10: memref<16x128xbf16, #tpu.memory_space<vmem>>) attributes {dimension_semantics = [#tpu.dimension_semantics<parallel>], iteration_bounds = array<i64: 1>, scalar_prefetch = 0 : i64, scratch_operands = 0 : i64, tpu.core_type = #tpu.core_type<tc>, window_params = [{transform_indices = @transform_0, window_bounds = array<i64: 16, 32>}, {pipeline_mode = #tpu.pipeline_mode<synchronous>, transform_indices = @transform_1, window_bounds = array<i64: 32, 32>}, {pipeline_mode = #tpu.pipeline_mode<synchronous>, transform_indices = @transform_2, window_bounds = array<i64: 1, 32>}, {pipeline_mode = #tpu.pipeline_mode<synchronous>, transform_indices = @transform_3, window_bounds = array<i64: 32, 32>}, {pipeline_mode = #tpu.pipeline_mode<synchronous>, transform_indices = @transform_4, window_bounds = array<i64: 1, 32>}, {pipeline_mode = #tpu.pipeline_mode<synchronous>, transform_indices = @transform_5, window_bounds = array<i64: 32, 32>}, {pipeline_mode = #tpu.pipeline_mode<synchronous>, transform_indices = @transform_6, window_bounds = array<i64: 1, 32>}, {pipeline_mode = #tpu.pipeline_mode<synchronous>, transform_indices = @transform_7, window_bounds = array<i64: 32, 128>}, {pipeline_mode = #tpu.pipeline_mode<synchronous>, transform_indices = @transform_8, window_bounds = array<i64: 1, 128>}, {transform_indices = @transform_9, window_bounds = array<i64: 16, 128>}]} {
    %c0 = arith.constant 0 : index
    %c0_0 = arith.constant 0 : index
    %0 = vector.load %arg1[%c0, %c0_0] : memref<16x32xf32, #tpu.memory_space<vmem>>, vector<16x32xf32>
    %1 = arith.truncf %0 : vector<16x32xf32> to vector<16x32xbf16>
    %c0_1 = arith.constant 0 : index
    %c0_2 = arith.constant 0 : index
    %2 = vector.load %arg2[%c0_1, %c0_2] : memref<32x32xbf16, #tpu.memory_space<vmem>>, vector<32x32xbf16>
    %cst = arith.constant dense<0.000000e+00> : vector<16x32xf32>
    %3 = tpu.matmul %1, %2, %cst {dimension_numbers = #tpu.dot_dimension_numbers<[1], [0], [0], [1], [0, 0, 1, 1], [], []>} : vector<16x32xbf16>, vector<32x32xbf16>, vector<16x32xf32> -> vector<16x32xf32>
    %c0_3 = arith.constant 0 : index
    %c0_4 = arith.constant 0 : index
    %4 = vector.load %arg3[%c0_3, %c0_4] : memref<1x32xf32, #tpu.memory_space<vmem>>, vector<1x32xf32>
    %5 = vector.broadcast %4 : vector<1x32xf32> to vector<16x32xf32>
    %6 = arith.addf %3, %5 : vector<16x32xf32>
    %cst_5 = arith.constant 0.000000e+00 : f32
    %7 = vector.broadcast %cst_5 : f32 to vector<16x32xf32>
    %8 = arith.maximumf %6, %7 : vector<16x32xf32>
    %9 = arith.truncf %8 : vector<16x32xf32> to vector<16x32xbf16>
    %c0_6 = arith.constant 0 : index
    %c0_7 = arith.constant 0 : index
    %10 = vector.load %arg4[%c0_6, %c0_7] : memref<32x32xbf16, #tpu.memory_space<vmem>>, vector<32x32xbf16>
    %cst_8 = arith.constant dense<0.000000e+00> : vector<16x32xf32>
    %11 = tpu.matmul %9, %10, %cst_8 {dimension_numbers = #tpu.dot_dimension_numbers<[1], [0], [0], [1], [0, 0, 1, 1], [], []>} : vector<16x32xbf16>, vector<32x32xbf16>, vector<16x32xf32> -> vector<16x32xf32>
    %c0_9 = arith.constant 0 : index
    %c0_10 = arith.constant 0 : index
    %12 = vector.load %arg5[%c0_9, %c0_10] : memref<1x32xf32, #tpu.memory_space<vmem>>, vector<1x32xf32>
    %13 = vector.broadcast %12 : vector<1x32xf32> to vector<16x32xf32>
    %14 = arith.addf %11, %13 : vector<16x32xf32>
    %cst_11 = arith.constant 0.000000e+00 : f32
    %15 = vector.broadcast %cst_11 : f32 to vector<16x32xf32>
    %16 = arith.maximumf %14, %15 : vector<16x32xf32>
    %17 = arith.truncf %16 : vector<16x32xf32> to vector<16x32xbf16>
    %c0_12 = arith.constant 0 : index
    %c0_13 = arith.constant 0 : index
    %18 = vector.load %arg6[%c0_12, %c0_13] : memref<32x32xbf16, #tpu.memory_space<vmem>>, vector<32x32xbf16>
    %cst_14 = arith.constant dense<0.000000e+00> : vector<16x32xf32>
    %19 = tpu.matmul %17, %18, %cst_14 {dimension_numbers = #tpu.dot_dimension_numbers<[1], [0], [0], [1], [0, 0, 1, 1], [], []>} : vector<16x32xbf16>, vector<32x32xbf16>, vector<16x32xf32> -> vector<16x32xf32>
    %c0_15 = arith.constant 0 : index
    %c0_16 = arith.constant 0 : index
    %20 = vector.load %arg7[%c0_15, %c0_16] : memref<1x32xf32, #tpu.memory_space<vmem>>, vector<1x32xf32>
    %21 = vector.broadcast %20 : vector<1x32xf32> to vector<16x32xf32>
    %22 = arith.addf %19, %21 : vector<16x32xf32>
    %cst_17 = arith.constant 0.000000e+00 : f32
    %23 = vector.broadcast %cst_17 : f32 to vector<16x32xf32>
    %24 = arith.maximumf %22, %23 : vector<16x32xf32>
    %25 = arith.truncf %24 : vector<16x32xf32> to vector<16x32xbf16>
    %c0_18 = arith.constant 0 : index
    %c0_19 = arith.constant 0 : index
    %26 = vector.load %arg8[%c0_18, %c0_19] : memref<32x128xbf16, #tpu.memory_space<vmem>>, vector<32x128xbf16>
    %cst_20 = arith.constant dense<0.000000e+00> : vector<16x128xf32>
    %27 = tpu.matmul %25, %26, %cst_20 {dimension_numbers = #tpu.dot_dimension_numbers<[1], [0], [0], [1], [0, 0, 1, 1], [], []>} : vector<16x32xbf16>, vector<32x128xbf16>, vector<16x128xf32> -> vector<16x128xf32>
    %c0_21 = arith.constant 0 : index
    %c0_22 = arith.constant 0 : index
    %28 = vector.load %arg9[%c0_21, %c0_22] : memref<1x128xf32, #tpu.memory_space<vmem>>, vector<1x128xf32>
    %29 = vector.broadcast %28 : vector<1x128xf32> to vector<16x128xf32>
    %30 = arith.addf %27, %29 : vector<16x128xf32>
    %31 = tpu.iota {dimensions = array<i32: 1>} : vector<16x128xi32>
    %c8_i32 = arith.constant 8 : i32
    %32 = vector.broadcast %c8_i32 : i32 to vector<16x128xi32>
    %33 = arith.cmpi slt, %31, %32 : vector<16x128xi32>
    %cst_23 = arith.constant -1.000000e+30 : f32
    %34 = vector.broadcast %cst_23 : f32 to vector<16x128xf32>
    %35 = arith.select %33, %30, %34 : vector<16x128xi1>, vector<16x128xf32>
    %cst_24 = arith.constant dense<0xFF800000> : vector<16xf32>
    %36 = vector.multi_reduction <maximumf>, %35, %cst_24 [1] : vector<16x128xf32> to vector<16xf32>
    %37 = vector.shape_cast %36 : vector<16xf32> to vector<16x1xf32>
    %38 = vector.broadcast %37 : vector<16x1xf32> to vector<16x128xf32>
    %39 = arith.subf %35, %38 : vector<16x128xf32>
    %40 = math.exp %39 : vector<16x128xf32>
    %cst_25 = arith.constant dense<0.000000e+00> : vector<16xf32>
    %41 = vector.multi_reduction <add>, %40, %cst_25 [1] : vector<16x128xf32> to vector<16xf32>
    %42 = vector.shape_cast %41 : vector<16xf32> to vector<16x1xf32>
    %43 = vector.broadcast %42 : vector<16x1xf32> to vector<16x128xf32>
    %44 = arith.divf %40, %43 : vector<16x128xf32>
    %45 = arith.truncf %44 : vector<16x128xf32> to vector<16x128xbf16>
    %c0_26 = arith.constant 0 : index
    %c0_27 = arith.constant 0 : index
    %46 = vector.load %arg10[%c0_26, %c0_27] : memref<16x128xbf16, #tpu.memory_space<vmem>>, vector<16x128xbf16>
    tpu.vector_store %arg10[%c0_26, %c0_27], %45 {strides = array<i32>} : memref<16x128xbf16, #tpu.memory_space<vmem>>, vector<16x128xbf16>,
    return
  }
  func.func @transform_0(%arg0: i32) -> (i32, i32) {
    %c0_i32 = arith.constant 0 : i32
    %c0_i32_0 = arith.constant 0 : i32
    return %arg0, %c0_i32 : i32, i32
  }
  func.func @transform_1(%arg0: i32) -> (i32, i32) {
    %c0_i32 = arith.constant 0 : i32
    %c0_i32_0 = arith.constant 0 : i32
    %c0_i32_1 = arith.constant 0 : i32
    return %c0_i32, %c0_i32_0 : i32, i32
  }
  func.func @transform_2(%arg0: i32) -> (i32, i32) {
    %c0_i32 = arith.constant 0 : i32
    %c0_i32_0 = arith.constant 0 : i32
    %c0_i32_1 = arith.constant 0 : i32
    return %c0_i32, %c0_i32_0 : i32, i32
  }
  func.func @transform_3(%arg0: i32) -> (i32, i32) {
    %c0_i32 = arith.constant 0 : i32
    %c0_i32_0 = arith.constant 0 : i32
    %c0_i32_1 = arith.constant 0 : i32
    return %c0_i32, %c0_i32_0 : i32, i32
  }
  func.func @transform_4(%arg0: i32) -> (i32, i32) {
    %c0_i32 = arith.constant 0 : i32
    %c0_i32_0 = arith.constant 0 : i32
    %c0_i32_1 = arith.constant 0 : i32
    return %c0_i32, %c0_i32_0 : i32, i32
  }
  func.func @transform_5(%arg0: i32) -> (i32, i32) {
    %c0_i32 = arith.constant 0 : i32
    %c0_i32_0 = arith.constant 0 : i32
    %c0_i32_1 = arith.constant 0 : i32
    return %c0_i32, %c0_i32_0 : i32, i32
  }
  func.func @transform_6(%arg0: i32) -> (i32, i32) {
    %c0_i32 = arith.constant 0 : i32
    %c0_i32_0 = arith.constant 0 : i32
    %c0_i32_1 = arith.constant 0 : i32
    return %c0_i32, %c0_i32_0 : i32, i32
  }
  func.func @transform_7(%arg0: i32) -> (i32, i32) {
    %c0_i32 = arith.constant 0 : i32
    %c0_i32_0 = arith.constant 0 : i32
    %c0_i32_1 = arith.constant 0 : i32
    return %c0_i32, %c0_i32_0 : i32, i32
  }
  func.func @transform_8(%arg0: i32) -> (i32, i32) {
    %c0_i32 = arith.constant 0 : i32
    %c0_i32_0 = arith.constant 0 : i32
    %c0_i32_1 = arith.constant 0 : i32
    return %c0_i32, %c0_i32_0 : i32, i32
  }
  func.func @transform_9(%arg0: i32) -> (i32, i32) {
    %c0_i32 = arith.constant 0 : i32
    %c0_i32_0 = arith.constant 0 : i32
    return %arg0, %c0_i32 : i32, i32
  }
}

</mosaic_0001>

<bundles_post_ra>
// kernel: _movienet_forward_padded.1
= control target key start
LH: loop header
LB: loop body
LE: loop exit
PB: predicated region body
PF: predicated region fallthrough
CT: control target
= control target key end

     0   :  { %v438_v0 = vmov 0.0   ;;  %vm439_vm0 = vmmov 0   ;;  %vm59_vm1 = vcmask 261120   ;;  %v314_v42 = vlaneseq  ;;  %s543_s1 = inlined_call_operand.vmem [shape: bf16[32,32], index: 1, kind: input, shape index: {}]   ;;  %s544_s0 = inlined_call_operand.vmem [shape: f32[16,32], index: 0, kind: input, shape index: {}]   ;;  %s545_s3 = inlined_call_operand.vmem [shape: bf16[32,32], index: 3, kind: input, shape index: {}]   ;;  %s546_s2 = inlined_call_operand.vmem [shape: f32[1,32], index: 2, kind: input, shape index: {}]   ;;  %s547_s5 = inlined_call_operand.vmem [shape: bf16[32,32], index: 5, kind: input, shape index: {}]   ;;  %s548_s4 = inlined_call_operand.vmem [shape: f32[1,32], index: 4, kind: input, shape index: {}]   ;;  %s549_s7 = inlined_call_operand.vmem [shape: bf16[32,128], index: 7, kind: input, shape index: {}]   ;;  %s550_s6 = inlined_call_operand.vmem [shape: f32[1,32], index: 6, kind: input, shape index: {}]   ;;  %s551_s8 = inlined_call_operand.vmem [shape: f32[1,128], index: 8, kind: input, shape index: {}]   ;;  %s552_s9 = inlined_call_operand.vmem [shape: bf16[16,128], index: 9, kind: output, shape index: {}]  }
   0x1   :  { %388 = vmatprep.subr.bf16.mxu0 %v438_v0  ;;  %v422_v1 = vld [vmem:[%s543_s1] sm:$0xff]   ;;  %392 = vmatprep.mubr.msk.bf16.mxu0 %vm439_vm0, %v438_v0  ;;  %v423_v2 = vld [vmem:[%s543_s1 + $0x8] sm:$0xff]  }
   0x2   :  { %396 = vmatprep.subr.bf16.mxu1 %v438_v0  ;;  %400 = vmatprep.mubr.msk.bf16.mxu1 %vm439_vm0, %v438_v0  ;;  %v33_v3 = vld [vmem:[%s544_s0] sm:$0xff]  ;;  %v34_v4 = vld [vmem:[%s544_s0 + $0x8] sm:$0xff]  ;;  %v315_v43 = vand.u32 127, %v314_v42 }
   0x3   :  { %389 = vmatpush3.bf16.msra.mxu0 %v422_v1  ;;  %v35_v5 = vpack.c.bf16 %v34_v4, %v33_v3  ;;  %v424_v6 = vld [vmem:[%s545_s3] sm:$0xff]   ;;  %v425_v7 = vld [vmem:[%s545_s3 + $0x8] sm:$0xff]  }
   0x4   :  { %390 = vmatprep.subr.bf16.mxu0 %v438_v0  ;;  %397 = vmatpush3.bf16.msra.mxu1 %v424_v6  ;;  %v351_v8 = vld [vmem:[%s546_s2] ss:$0 sm:$0xff]  ;;  %v427_v19 = vld [vmem:[%s547_s5 + $0x8] sm:$0xff]   ;;  %vm316_vm2 = vcmp.lt.s32.totalorder %v315_v43, 8 }
   0x5   :  { %398 = vmatprep.subr.bf16.mxu1 %v438_v0  ;;  %v426_v18 = vld [vmem:[%s547_s5] sm:$0xff]   ;;  %v429_v31 = vld [vmem:[%s549_s7 + $0x8] sm:$0xff]  }
   0x6   :  { %v355_v20 = vld [vmem:[%s548_s4] ss:$0 sm:$0xff] }
   0x7   :  { %391 = vmatpush3.bf16.msra.mxu0 %v423_v2  ;;  %v428_v30 = vld [vmem:[%s549_s7] sm:$0xff]  }
   0x8   :  { %404 = vmatprep.subr.bf16.mxu0 %v438_v0  ;;  %399 = vmatpush3.bf16.msra.mxu1 %v425_v7  ;;  %v359_v32 = vld [vmem:[%s550_s6] ss:$0 sm:$0xff] }
   0x9   :  { %412 = vmatprep.subr.bf16.mxu1 %v438_v0  ;;  %v363_v44 = vld [vmem:[%s551_s8] ss:$0 sm:$0xff] }
   0xa   :  { %393 = vmatmul.mubr.msk.bf16.vlgmr.msra.gmra.mrb[0].mxu0 %vm59_vm1, %v35_v5 }
   0xb   :  { %408 = vmatprep.mubr.msk.bf16.mxu0 %vm439_vm0, %v438_v0  ;;  %405 = vmatpush3.bf16.msra.mxu0 %v426_v18 }
   0xc   :  { %406 = vmatprep.subr.bf16.mxu0 %v438_v0 }
   0xf   :  { %407 = vmatpush3.bf16.msra.mxu0 %v427_v19 }
  0xdd   :  { %v97_v9 = vpop.f32.mrb[0].mxu0 }
  0xde   :  { %v98_v10 = vadd.f32 %v351_v8, %v97_v9  ;;  %v394_v11 = vpop.f32.mrb[1].mxu0 }
  0xdf   :  { %v100_v12 = vpop.f32.mrb[2].mxu0 }
  0xe0   :  { %v101_v13 = vadd.f32 %v351_v8, %v100_v12  ;;  %v395_v14 = vpop.f32.mrb[3].mxu0  ;;  %v104_v15 = vmax.f32 %v98_v10, 0.0 }
  0xe2   :  { %v105_v16 = vmax.f32 %v101_v13, 0.0 }
  0xe4   :  { %v106_v17 = vpack.c.bf16 %v105_v16, %v104_v15 }
  0xe6   :  { %401 = vmatmul.mubr.msk.bf16.vlgmr.msra.gmra.mrb[0].mxu1 %vm59_vm1, %v106_v17 }
  0xe7   :  { %416 = vmatprep.mubr.msk.bf16.mxu1 %vm439_vm0, %v438_v0  ;;  %413 = vmatpush3.bf16.msra.mxu1 %v428_v30 }
  0xe8   :  { %414 = vmatprep.subr.bf16.mxu1 %v438_v0 }
  0xeb   :  { %415 = vmatpush3.bf16.msra.mxu1 %v429_v31 }
 0x1b9   :  { %v167_v21 = vpop.f32.mrb[0].mxu1 }
 0x1ba   :  { %v168_v22 = vadd.f32 %v355_v20, %v167_v21  ;;  %v402_v23 = vpop.f32.mrb[1].mxu1 }
 0x1bb   :  { %v170_v24 = vpop.f32.mrb[2].mxu1 }
 0x1bc   :  { %v171_v25 = vadd.f32 %v355_v20, %v170_v24  ;;  %v403_v26 = vpop.f32.mrb[3].mxu1  ;;  %v174_v27 = vmax.f32 %v168_v22, 0.0 }
 0x1be   :  { %v175_v28 = vmax.f32 %v171_v25, 0.0 }
 0x1c0   :  { %v176_v29 = vpack.c.bf16 %v175_v28, %v174_v27 }
 0x1c2   :  { %409 = vmatmul.mubr.msk.bf16.vlgmr.msra.gmra.mrb[4].mxu0 %vm59_vm1, %v176_v29 }
 0x295   :  { %v237_v33 = vpop.f32.mrb[4].mxu0 }
 0x296   :  { %v238_v34 = vadd.f32 %v359_v32, %v237_v33  ;;  %v410_v35 = vpop.f32.mrb[5].mxu0 }
 0x297   :  { %v240_v36 = vpop.f32.mrb[6].mxu0 }
 0x298   :  { %v241_v37 = vadd.f32 %v359_v32, %v240_v36  ;;  %v411_v38 = vpop.f32.mrb[7].mxu0  ;;  %v244_v39 = vmax.f32 %v238_v34, 0.0 }
 0x29a   :  { %v245_v40 = vmax.f32 %v241_v37, 0.0 }
 0x29c   :  { %v246_v41 = vpack.c.bf16 %v245_v40, %v244_v39 }
 0x29e   :  { %417 = vmatmul.mubr.msk.bf16.vlgmr.msra.gmra.mrb[4].mxu1 %vm59_vm1, %v246_v41 }
 0x371   :  { %v307_v45 = vpop.f32.mrb[4].mxu1 }
 0x372   :  { %v308_v46 = vadd.f32 %v363_v44, %v307_v45  ;;  %v418_v47 = vpop.f32.mrb[5].mxu1 }
 0x373   :  { %v310_v48 = vpop.f32.mrb[6].mxu1 }
 0x374   :  { %v311_v49 = vadd.f32 %v363_v44, %v310_v48  ;;  %v419_v50 = vpop.f32.mrb[7].mxu1  ;;  %v317_v51 = vsel %vm316_vm2, %v308_v46, -1e+30 }
 0x375   :  { %319 = vmax.xlane.f32.xlu0 %v317_v51 }
 0x376   :  { %v318_v52 = vsel %vm316_vm2, %v311_v49, -1e+30 }
 0x379   :  { %321 = vmax.xlane.f32.xlu0 %v318_v52 }
 0x402   :  { %v320_v53 = vpop.xlane.xlu0 %319 }
 0x403   :  { %v323_v54 = vsub.f32 %v317_v51, %v320_v53 }
 0x405   :  { %v325_v55 = vmul.f32 1.442695, %v323_v54 }
 0x406   :  { %v322_v56 = vpop.xlane.xlu0 %321 }
 0x407   :  { %430 = vpow2.f32 %v325_v55  ;;  %v324_v57 = vsub.f32 %v318_v52, %v322_v56 }
 0x409   :  { %v327_v58 = vmul.f32 1.442695, %v324_v57 }
 0x40b   :  { %432 = vpow2.f32 %v327_v58 }
 0x411   :  { %v431_v59 = vpop.eup %430 }
 0x412   :  { %329 = vadd.xlane.f32.xlu1 %v431_v59 }
 0x415   :  { %v433_v60 = vpop.eup %432 }
 0x416   :  { %331 = vadd.xlane.f32.xlu1 %v433_v60 }
 0x49f   :  { %v330_v61 = vpop.xlane.xlu1 %329 }
 0x4a0   :  { %434 = vrcp.f32 %v330_v61 }
 0x4a3   :  { %v332_v62 = vpop.xlane.xlu1 %331 }
 0x4a4   :  { %436 = vrcp.f32 %v332_v62 }
 0x4aa   :  { %v435_v63 = vpop.eup %434 }
 0x4ab   :  { %v334_v1 = vmul.f32 %v435_v63, %v431_v59 }
 0x4ae   :  { %v437_v0 = vpop.eup %436 }
 0x4af   :  { %v336_v2 = vmul.f32 %v437_v0, %v433_v60 }
 0x4b1   :  { %v374_v3 = vpack.c.bf16 %v336_v2, %v334_v1 }
 0x4b3   :  { %375 = vst [vmem:[%s552_s9] sm:$0xff] %v374_v3  }

</bundles_post_ra>
